<compile_context>
chip_gen: v5e
topology: v5e:2x2
jax: 0.10.0
libtpu: 0.0.40
codegen_flags: <defaults>
</compile_context>

<pallas_src>
import jax
import jax.numpy as jnp
from jax.experimental import pallas as pl
from jax.experimental.pallas import tpu as pltpu


_PARAM_ORDER = ("w_self", "b_self", "w1", "b1", "gamma", "beta",
                "rmean", "rvar", "w2", "b2")
_PARAMS_PER_LAYER = len(_PARAM_ORDER)


def _gcn_fused_kernel(x_ref, adj_ref, *refs):
    """Whole GCN forward (layer_type == 'R-GIN', eval mode) in one invocation."""
    out_ref = refs[-1]
    param_refs = refs[:-1]
    n_layers = len(param_refs) // _PARAMS_PER_LAYER
    num_relations = adj_ref.shape[0]

    x = x_ref[...]  # [N, fin], f32

    for li in range(n_layers):
        (wself_ref, bself_ref, w1_ref, b1_ref, gamma_ref, beta_ref,
         rmean_ref, rvar_ref, w2_ref, b2_ref) = param_refs[
             li * _PARAMS_PER_LAYER:(li + 1) * _PARAMS_PER_LAYER]

        # Self-loop Linear initializes the accumulator (kept in vregs).
        acc = (jnp.dot(x, wself_ref[...], preferred_element_type=jnp.float32)
               + bself_ref[...])

        # Unrolled loop over relations (R is tiny); everything stays on-chip.
        for r in range(num_relations):
            # GIN aggregation: sum of neighbor features = adj[r] @ x,
            # then (1 + eps) * x + sum_j x_j with eps = 0 (GINConv default).
            agg = jnp.dot(adj_ref[r], x, preferred_element_type=jnp.float32)
            h = x + agg

            # MLP: Linear -> BatchNorm1d (eval: running stats) -> ReLU -> Linear
            h = (jnp.dot(h, w1_ref[r], preferred_element_type=jnp.float32)
                 + b1_ref[r])
            inv = jax.lax.rsqrt(rvar_ref[r] + 1e-5)          # EUP, cheap
            h = (h - rmean_ref[r]) * (gamma_ref[r] * inv) + beta_ref[r]
            h = jnp.maximum(h, 0.0)
            h = (jnp.dot(h, w2_ref[r], preferred_element_type=jnp.float32)
                 + b2_ref[r])
            acc = acc + h

        if li != n_layers - 1:
            # Inter-layer ReLU fused in-kernel; Dropout is identity (eval).
            x = jnp.maximum(acc, 0.0)
        else:
            x = acc

    # Single unconditional store of the final result.
    out_ref[...] = x.astype(out_ref.dtype)


def gcn_forward(x, adj, layer_params):
    """GCN.forward for layer_type == 'R-GIN' (eval mode), fused into one kernel.

    x:   [N, input_dim] f32
    adj: [R, N, N] f32 dense per-relation adjacency (adj[r, dst, src] = count)
    """
    n_nodes = x.shape[0]
    fout = layer_params[-1]["w_self"].shape[1]
    flat_params = [p[name] for p in layer_params for name in _PARAM_ORDER]
    n_inputs = 2 + len(flat_params)

    def vmem_spec():
        return pl.BlockSpec(memory_space=pltpu.MemorySpace.VMEM)

    return pl.pallas_call(
        _gcn_fused_kernel,
        out_shape=jax.ShapeDtypeStruct((n_nodes, fout), jnp.float32),
        in_specs=[vmem_spec() for _ in range(n_inputs)],
        out_specs=vmem_spec(),
    )(x, adj, *flat_params)


# ---------------- deterministic parameter / input construction ----------------

def _init_linear(key, fin, fout):
    k1, k2 = jax.random.split(key)
    bound = 1.0 / jnp.sqrt(jnp.float32(fin))
    w = jax.random.uniform(k1, (fin, fout), jnp.float32, -bound, bound)
    b = jax.random.uniform(k2, (1, fout), jnp.float32, -bound, bound)
    return w, b


def init_rgin_layer(key, fin, fout, num_relations):
    keys = jax.random.split(key, 2 * num_relations + 1)
    w_self, b_self = _init_linear(keys[0], fin, fout)
    w1s, b1s, w2s, b2s = [], [], [], []
    for r in range(num_relations):
        w1, b1 = _init_linear(keys[1 + 2 * r], fin, fout)
        w2, b2 = _init_linear(keys[2 + 2 * r], fout, fout)
        w1s.append(w1); b1s.append(b1); w2s.append(w2); b2s.append(b2)
    return {
        "w_self": w_self,                                        # [fin, fout]
        "b_self": b_self,                                        # [1, fout]
        "w1": jnp.stack(w1s),                                    # [R, fin, fout]
        "b1": jnp.stack(b1s),                                    # [R, 1, fout]
        "gamma": jnp.ones((num_relations, 1, fout), jnp.float32),
        "beta": jnp.zeros((num_relations, 1, fout), jnp.float32),
        "rmean": jnp.zeros((num_relations, 1, fout), jnp.float32),  # BN running mean
        "rvar": jnp.ones((num_relations, 1, fout), jnp.float32),    # BN running var
        "w2": jnp.stack(w2s),                                    # [R, fout, fout]
        "b2": jnp.stack(b2s),                                    # [R, 1, fout]
    }


if __name__ == "__main__":
    # args: input_dim=8, hidden_layers=(32,), output_dim=8,
    #       num_relations=3, layer_type='R-GIN', dropout=0.5 (eval => identity)
    input_dim, hidden, output_dim = 8, 32, 8
    num_relations = 3
    N, E = 16, 48

    key = jax.random.PRNGKey(0)
    kx, ks, kd, kt, kl0, kl1 = jax.random.split(key, 6)

    x = jax.random.normal(kx, (N, input_dim), jnp.float32)
    edge_src = jax.random.randint(ks, (E,), 0, N)
    edge_dst = jax.random.randint(kd, (E,), 0, N)
    edge_type = jax.random.randint(kt, (E,), 0, num_relations)

    # Dense per-relation adjacency built once in plain JAX (glue).
    # At scale: store as int8 (v5e/v6e MXU) or bf16 (v7x) to cut the O(N^2) DMA.
    adj = jnp.zeros((num_relations, N, N), jnp.float32)
    adj = adj.at[edge_type, edge_dst, edge_src].add(1.0)

    layer_params = [
        init_rgin_layer(kl0, input_dim, hidden, num_relations),
        init_rgin_layer(kl1, hidden, output_dim, num_relations),
    ]

    out = jax.jit(gcn_forward)(x, adj, layer_params)
    jax.block_until_ready(out)
    assert out.shape == (N, output_dim)
    print("KERNEL_OK")
</pallas_src>

<mosaic_0001>
module attributes {stable_mosaic.version = 11 : i64} {
  func.func @_gcn_fused_kernel(%arg0: memref<16x8xf32, #tpu.memory_space<vmem>>, %arg1: memref<3x16x16xf32, #tpu.memory_space<vmem>>, %arg2: memref<8x32xf32, #tpu.memory_space<vmem>>, %arg3: memref<1x32xf32, #tpu.memory_space<vmem>>, %arg4: memref<3x8x32xf32, #tpu.memory_space<vmem>>, %arg5: memref<3x1x32xf32, #tpu.memory_space<vmem>>, %arg6: memref<3x1x32xf32, #tpu.memory_space<vmem>>, %arg7: memref<3x1x32xf32, #tpu.memory_space<vmem>>, %arg8: memref<3x1x32xf32, #tpu.memory_space<vmem>>, %arg9: memref<3x1x32xf32, #tpu.memory_space<vmem>>, %arg10: memref<3x32x32xf32, #tpu.memory_space<vmem>>, %arg11: memref<3x1x32xf32, #tpu.memory_space<vmem>>, %arg12: memref<32x8xf32, #tpu.memory_space<vmem>>, %arg13: memref<1x8xf32, #tpu.memory_space<vmem>>, %arg14: memref<3x32x8xf32, #tpu.memory_space<vmem>>, %arg15: memref<3x1x8xf32, #tpu.memory_space<vmem>>, %arg16: memref<3x1x8xf32, #tpu.memory_space<vmem>>, %arg17: memref<3x1x8xf32, #tpu.memory_space<vmem>>, %arg18: memref<3x1x8xf32, #tpu.memory_space<vmem>>, %arg19: memref<3x1x8xf32, #tpu.memory_space<vmem>>, %arg20: memref<3x8x8xf32, #tpu.memory_space<vmem>>, %arg21: memref<3x1x8xf32, #tpu.memory_space<vmem>>, %arg22: memref<16x8xf32, #tpu.memory_space<vmem>>) attributes {dimension_semantics = [], scalar_prefetch = 0 : i64, scratch_operands = 0 : i64, tpu.core_type = #tpu.core_type<tc>} {
    %c0 = arith.constant 0 : index
    %c0_0 = arith.constant 0 : index
    %0 = vector.load %arg0[%c0, %c0_0] : memref<16x8xf32, #tpu.memory_space<vmem>>, vector<16x8xf32>
    %c0_1 = arith.constant 0 : index
    %c0_2 = arith.constant 0 : index
    %1 = vector.load %arg2[%c0_1, %c0_2] : memref<8x32xf32, #tpu.memory_space<vmem>>, vector<8x32xf32>
    %cst = arith.constant dense<0.000000e+00> : vector<16x32xf32>
    %2 = tpu.matmul %0, %1, %cst {dimension_numbers = #tpu.dot_dimension_numbers<[1], [0], [0], [1], [0, 0, 1, 1], [], []>} : vector<16x8xf32>, vector<8x32xf32>, vector<16x32xf32> -> vector<16x32xf32>
    %c0_3 = arith.constant 0 : index
    %c0_4 = arith.constant 0 : index
    %3 = vector.load %arg3[%c0_3, %c0_4] : memref<1x32xf32, #tpu.memory_space<vmem>>, vector<1x32xf32>
    %4 = vector.broadcast %3 : vector<1x32xf32> to vector<16x32xf32>
    %5 = arith.addf %2, %4 : vector<16x32xf32>
    %c0_5 = arith.constant 0 : index
    %c0_6 = arith.constant 0 : index
    %c0_7 = arith.constant 0 : index
    %6 = vector.load %arg1[%c0_5, %c0_6, %c0_7] : memref<3x16x16xf32, #tpu.memory_space<vmem>>, vector<1x16x16xf32>
    %7 = vector.shape_cast %6 : vector<1x16x16xf32> to vector<16x16xf32>
    %cst_8 = arith.constant dense<0.000000e+00> : vector<16x8xf32>
    %8 = tpu.matmul %7, %0, %cst_8 {dimension_numbers = #tpu.dot_dimension_numbers<[1], [0], [0], [1], [0, 0, 1, 1], [], []>} : vector<16x16xf32>, vector<16x8xf32>, vector<16x8xf32> -> vector<16x8xf32>
    %9 = arith.addf %0, %8 : vector<16x8xf32>
    %c0_9 = arith.constant 0 : index
    %c0_10 = arith.constant 0 : index
    %c0_11 = arith.constant 0 : index
    %10 = vector.load %arg4[%c0_9, %c0_10, %c0_11] : memref<3x8x32xf32, #tpu.memory_space<vmem>>, vector<1x8x32xf32>
    %11 = vector.shape_cast %10 : vector<1x8x32xf32> to vector<8x32xf32>
    %cst_12 = arith.constant dense<0.000000e+00> : vector<16x32xf32>
    %12 = tpu.matmul %9, %11, %cst_12 {dimension_numbers = #tpu.dot_dimension_numbers<[1], [0], [0], [1], [0, 0, 1, 1], [], []>} : vector<16x8xf32>, vector<8x32xf32>, vector<16x32xf32> -> vector<16x32xf32>
    %c0_13 = arith.constant 0 : index
    %c0_14 = arith.constant 0 : index
    %c0_15 = arith.constant 0 : index
    %13 = vector.load %arg5[%c0_13, %c0_14, %c0_15] : memref<3x1x32xf32, #tpu.memory_space<vmem>>, vector<1x1x32xf32>
    %14 = vector.shape_cast %13 : vector<1x1x32xf32> to vector<1x32xf32>
    %15 = vector.broadcast %14 : vector<1x32xf32> to vector<16x32xf32>
    %16 = arith.addf %12, %15 : vector<16x32xf32>
    %c0_16 = arith.constant 0 : index
    %c0_17 = arith.constant 0 : index
    %c0_18 = arith.constant 0 : index
    %17 = vector.load %arg9[%c0_16, %c0_17, %c0_18] : memref<3x1x32xf32, #tpu.memory_space<vmem>>, vector<1x1x32xf32>
    %18 = vector.shape_cast %17 : vector<1x1x32xf32> to vector<1x32xf32>
    %cst_19 = arith.constant 9.99999974E-6 : f32
    %19 = vector.broadcast %cst_19 : f32 to vector<1x32xf32>
    %20 = arith.addf %18, %19 : vector<1x32xf32>
    %21 = math.rsqrt %20 : vector<1x32xf32>
    %c0_20 = arith.constant 0 : index
    %c0_21 = arith.constant 0 : index
    %c0_22 = arith.constant 0 : index
    %22 = vector.load %arg8[%c0_20, %c0_21, %c0_22] : memref<3x1x32xf32, #tpu.memory_space<vmem>>, vector<1x1x32xf32>
    %23 = vector.shape_cast %22 : vector<1x1x32xf32> to vector<1x32xf32>
    %24 = vector.broadcast %23 : vector<1x32xf32> to vector<16x32xf32>
    %25 = arith.subf %16, %24 : vector<16x32xf32>
    %c0_23 = arith.constant 0 : index
    %c0_24 = arith.constant 0 : index
    %c0_25 = arith.constant 0 : index
    %26 = vector.load %arg6[%c0_23, %c0_24, %c0_25] : memref<3x1x32xf32, #tpu.memory_space<vmem>>, vector<1x1x32xf32>
    %27 = vector.shape_cast %26 : vector<1x1x32xf32> to vector<1x32xf32>
    %28 = arith.mulf %27, %21 : vector<1x32xf32>
    %29 = vector.broadcast %28 : vector<1x32xf32> to vector<16x32xf32>
    %30 = arith.mulf %25, %29 : vector<16x32xf32>
    %c0_26 = arith.constant 0 : index
    %c0_27 = arith.constant 0 : index
    %c0_28 = arith.constant 0 : index
    %31 = vector.load %arg7[%c0_26, %c0_27, %c0_28] : memref<3x1x32xf32, #tpu.memory_space<vmem>>, vector<1x1x32xf32>
    %32 = vector.shape_cast %31 : vector<1x1x32xf32> to vector<1x32xf32>
    %33 = vector.broadcast %32 : vector<1x32xf32> to vector<16x32xf32>
    %34 = arith.addf %30, %33 : vector<16x32xf32>
    %cst_29 = arith.constant 0.000000e+00 : f32
    %35 = vector.broadcast %cst_29 : f32 to vector<16x32xf32>
    %36 = arith.maximumf %34, %35 : vector<16x32xf32>
    %c0_30 = arith.constant 0 : index
    %c0_31 = arith.constant 0 : index
    %c0_32 = arith.constant 0 : index
    %37 = vector.load %arg10[%c0_30, %c0_31, %c0_32] : memref<3x32x32xf32, #tpu.memory_space<vmem>>, vector<1x32x32xf32>
    %38 = vector.shape_cast %37 : vector<1x32x32xf32> to vector<32x32xf32>
    %cst_33 = arith.constant dense<0.000000e+00> : vector<16x32xf32>
    %39 = tpu.matmul %36, %38, %cst_33 {dimension_numbers = #tpu.dot_dimension_numbers<[1], [0], [0], [1], [0, 0, 1, 1], [], []>} : vector<16x32xf32>, vector<32x32xf32>, vector<16x32xf32> -> vector<16x32xf32>
    %c0_34 = arith.constant 0 : index
    %c0_35 = arith.constant 0 : index
    %c0_36 = arith.constant 0 : index
    %40 = vector.load %arg11[%c0_34, %c0_35, %c0_36] : memref<3x1x32xf32, #tpu.memory_space<vmem>>, vector<1x1x32xf32>
    %41 = vector.shape_cast %40 : vector<1x1x32xf32> to vector<1x32xf32>
    %42 = vector.broadcast %41 : vector<1x32xf32> to vector<16x32xf32>
    %43 = arith.addf %39, %42 : vector<16x32xf32>
    %44 = arith.addf %5, %43 : vector<16x32xf32>
    %c1 = arith.constant 1 : index
    %c0_37 = arith.constant 0 : index
    %c0_38 = arith.constant 0 : index
    %45 = vector.load %arg1[%c1, %c0_37, %c0_38] : memref<3x16x16xf32, #tpu.memory_space<vmem>>, vector<1x16x16xf32>
    %46 = vector.shape_cast %45 : vector<1x16x16xf32> to vector<16x16xf32>
    %cst_39 = arith.constant dense<0.000000e+00> : vector<16x8xf32>
    %47 = tpu.matmul %46, %0, %cst_39 {dimension_numbers = #tpu.dot_dimension_numbers<[1], [0], [0], [1], [0, 0, 1, 1], [], []>} : vector<16x16xf32>, vector<16x8xf32>, vector<16x8xf32> -> vector<16x8xf32>
    %48 = arith.addf %0, %47 : vector<16x8xf32>
    %c1_40 = arith.constant 1 : index
    %c0_41 = arith.constant 0 : index
    %c0_42 = arith.constant 0 : index
    %49 = vector.load %arg4[%c1_40, %c0_41, %c0_42] : memref<3x8x32xf32, #tpu.memory_space<vmem>>, vector<1x8x32xf32>
    %50 = vector.shape_cast %49 : vector<1x8x32xf32> to vector<8x32xf32>
    %cst_43 = arith.constant dense<0.000000e+00> : vector<16x32xf32>
    %51 = tpu.matmul %48, %50, %cst_43 {dimension_numbers = #tpu.dot_dimension_numbers<[1], [0], [0], [1], [0, 0, 1, 1], [], []>} : vector<16x8xf32>, vector<8x32xf32>, vector<16x32xf32> -> vector<16x32xf32>
    %c1_44 = arith.constant 1 : index
    %c0_45 = arith.constant 0 : index
    %c0_46 = arith.constant 0 : index
    %52 = vector.load %arg5[%c1_44, %c0_45, %c0_46] : memref<3x1x32xf32, #tpu.memory_space<vmem>>, vector<1x1x32xf32>
    %53 = vector.shape_cast %52 : vector<1x1x32xf32> to vector<1x32xf32>
    %54 = vector.broadcast %53 : vector<1x32xf32> to vector<16x32xf32>
    %55 = arith.addf %51, %54 : vector<16x32xf32>
    %c1_47 = arith.constant 1 : index
    %c0_48 = arith.constant 0 : index
    %c0_49 = arith.constant 0 : index
    %56 = vector.load %arg9[%c1_47, %c0_48, %c0_49] : memref<3x1x32xf32, #tpu.memory_space<vmem>>, vector<1x1x32xf32>
    %57 = vector.shape_cast %56 : vector<1x1x32xf32> to vector<1x32xf32>
    %cst_50 = arith.constant 9.99999974E-6 : f32
    %58 = vector.broadcast %cst_50 : f32 to vector<1x32xf32>
    %59 = arith.addf %57, %58 : vector<1x32xf32>
    %60 = math.rsqrt %59 : vector<1x32xf32>
    %c1_51 = arith.constant 1 : index
    %c0_52 = arith.constant 0 : index
    %c0_53 = arith.constant 0 : index
    %61 = vector.load %arg8[%c1_51, %c0_52, %c0_53] : memref<3x1x32xf32, #tpu.memory_space<vmem>>, vector<1x1x32xf32>
    %62 = vector.shape_cast %61 : vector<1x1x32xf32> to vector<1x32xf32>
    %63 = vector.broadcast %62 : vector<1x32xf32> to vector<16x32xf32>
    %64 = arith.subf %55, %63 : vector<16x32xf32>
    %c1_54 = arith.constant 1 : index
    %c0_55 = arith.constant 0 : index
    %c0_56 = arith.constant 0 : index
    %65 = vector.load %arg6[%c1_54, %c0_55, %c0_56] : memref<3x1x32xf32, #tpu.memory_space<vmem>>, vector<1x1x32xf32>
    %66 = vector.shape_cast %65 : vector<1x1x32xf32> to vector<1x32xf32>
    %67 = arith.mulf %66, %60 : vector<1x32xf32>
    %68 = vector.broadcast %67 : vector<1x32xf32> to vector<16x32xf32>
    %69 = arith.mulf %64, %68 : vector<16x32xf32>
    %c1_57 = arith.constant 1 : index
    %c0_58 = arith.constant 0 : index
    %c0_59 = arith.constant 0 : index
    %70 = vector.load %arg7[%c1_57, %c0_58, %c0_59] : memref<3x1x32xf32, #tpu.memory_space<vmem>>, vector<1x1x32xf32>
    %71 = vector.shape_cast %70 : vector<1x1x32xf32> to vector<1x32xf32>
    %72 = vector.broadcast %71 : vector<1x32xf32> to vector<16x32xf32>
    %73 = arith.addf %69, %72 : vector<16x32xf32>
    %cst_60 = arith.constant 0.000000e+00 : f32
    %74 = vector.broadcast %cst_60 : f32 to vector<16x32xf32>
    %75 = arith.maximumf %73, %74 : vector<16x32xf32>
    %c1_61 = arith.constant 1 : index
    %c0_62 = arith.constant 0 : index
    %c0_63 = arith.constant 0 : index
    %76 = vector.load %arg10[%c1_61, %c0_62, %c0_63] : memref<3x32x32xf32, #tpu.memory_space<vmem>>, vector<1x32x32xf32>
    %77 = vector.shape_cast %76 : vector<1x32x32xf32> to vector<32x32xf32>
    %cst_64 = arith.constant dense<0.000000e+00> : vector<16x32xf32>
    %78 = tpu.matmul %75, %77, %cst_64 {dimension_numbers = #tpu.dot_dimension_numbers<[1], [0], [0], [1], [0, 0, 1, 1], [], []>} : vector<16x32xf32>, vector<32x32xf32>, vector<16x32xf32> -> vector<16x32xf32>
    %c1_65 = arith.constant 1 : index
    %c0_66 = arith.constant 0 : index
    %c0_67 = arith.constant 0 : index
    %79 = vector.load %arg11[%c1_65, %c0_66, %c0_67] : memref<3x1x32xf32, #tpu.memory_space<vmem>>, vector<1x1x32xf32>
    %80 = vector.shape_cast %79 : vector<1x1x32xf32> to vector<1x32xf32>
    %81 = vector.broadcast %80 : vector<1x32xf32> to vector<16x32xf32>
    %82 = arith.addf %78, %81 : vector<16x32xf32>
    %83 = arith.addf %44, %82 : vector<16x32xf32>
    %c2 = arith.constant 2 : index
    %c0_68 = arith.constant 0 : index
    %c0_69 = arith.constant 0 : index
    %84 = vector.load %arg1[%c2, %c0_68, %c0_69] : memref<3x16x16xf32, #tpu.memory_space<vmem>>, vector<1x16x16xf32>
    %85 = vector.shape_cast %84 : vector<1x16x16xf32> to vector<16x16xf32>
    %cst_70 = arith.constant dense<0.000000e+00> : vector<16x8xf32>
    %86 = tpu.matmul %85, %0, %cst_70 {dimension_numbers = #tpu.dot_dimension_numbers<[1], [0], [0], [1], [0, 0, 1, 1], [], []>} : vector<16x16xf32>, vector<16x8xf32>, vector<16x8xf32> -> vector<16x8xf32>
    %87 = arith.addf %0, %86 : vector<16x8xf32>
    %c2_71 = arith.constant 2 : index
    %c0_72 = arith.constant 0 : index
    %c0_73 = arith.constant 0 : index
    %88 = vector.load %arg4[%c2_71, %c0_72, %c0_73] : memref<3x8x32xf32, #tpu.memory_space<vmem>>, vector<1x8x32xf32>
    %89 = vector.shape_cast %88 : vector<1x8x32xf32> to vector<8x32xf32>
    %cst_74 = arith.constant dense<0.000000e+00> : vector<16x32xf32>
    %90 = tpu.matmul %87, %89, %cst_74 {dimension_numbers = #tpu.dot_dimension_numbers<[1], [0], [0], [1], [0, 0, 1, 1], [], []>} : vector<16x8xf32>, vector<8x32xf32>, vector<16x32xf32> -> vector<16x32xf32>
    %c2_75 = arith.constant 2 : index
    %c0_76 = arith.constant 0 : index
    %c0_77 = arith.constant 0 : index
    %91 = vector.load %arg5[%c2_75, %c0_76, %c0_77] : memref<3x1x32xf32, #tpu.memory_space<vmem>>, vector<1x1x32xf32>
    %92 = vector.shape_cast %91 : vector<1x1x32xf32> to vector<1x32xf32>
    %93 = vector.broadcast %92 : vector<1x32xf32> to vector<16x32xf32>
    %94 = arith.addf %90, %93 : vector<16x32xf32>
    %c2_78 = arith.constant 2 : index
    %c0_79 = arith.constant 0 : index
    %c0_80 = arith.constant 0 : index
    %95 = vector.load %arg9[%c2_78, %c0_79, %c0_80] : memref<3x1x32xf32, #tpu.memory_space<vmem>>, vector<1x1x32xf32>
    %96 = vector.shape_cast %95 : vector<1x1x32xf32> to vector<1x32xf32>
    %cst_81 = arith.constant 9.99999974E-6 : f32
    %97 = vector.broadcast %cst_81 : f32 to vector<1x32xf32>
    %98 = arith.addf %96, %97 : vector<1x32xf32>
    %99 = math.rsqrt %98 : vector<1x32xf32>
    %c2_82 = arith.constant 2 : index
    %c0_83 = arith.constant 0 : index
    %c0_84 = arith.constant 0 : index
    %100 = vector.load %arg8[%c2_82, %c0_83, %c0_84] : memref<3x1x32xf32, #tpu.memory_space<vmem>>, vector<1x1x32xf32>
    %101 = vector.shape_cast %100 : vector<1x1x32xf32> to vector<1x32xf32>
    %102 = vector.broadcast %101 : vector<1x32xf32> to vector<16x32xf32>
    %103 = arith.subf %94, %102 : vector<16x32xf32>
    %c2_85 = arith.constant 2 : index
    %c0_86 = arith.constant 0 : index
    %c0_87 = arith.constant 0 : index
    %104 = vector.load %arg6[%c2_85, %c0_86, %c0_87] : memref<3x1x32xf32, #tpu.memory_space<vmem>>, vector<1x1x32xf32>
    %105 = vector.shape_cast %104 : vector<1x1x32xf32> to vector<1x32xf32>
    %106 = arith.mulf %105, %99 : vector<1x32xf32>
    %107 = vector.broadcast %106 : vector<1x32xf32> to vector<16x32xf32>
    %108 = arith.mulf %103, %107 : vector<16x32xf32>
    %c2_88 = arith.constant 2 : index
    %c0_89 = arith.constant 0 : index
    %c0_90 = arith.constant 0 : index
    %109 = vector.load %arg7[%c2_88, %c0_89, %c0_90] : memref<3x1x32xf32, #tpu.memory_space<vmem>>, vector<1x1x32xf32>
    %110 = vector.shape_cast %109 : vector<1x1x32xf32> to vector<1x32xf32>
    %111 = vector.broadcast %110 : vector<1x32xf32> to vector<16x32xf32>
    %112 = arith.addf %108, %111 : vector<16x32xf32>
    %cst_91 = arith.constant 0.000000e+00 : f32
    %113 = vector.broadcast %cst_91 : f32 to vector<16x32xf32>
    %114 = arith.maximumf %112, %113 : vector<16x32xf32>
    %c2_92 = arith.constant 2 : index
    %c0_93 = arith.constant 0 : index
    %c0_94 = arith.constant 0 : index
    %115 = vector.load %arg10[%c2_92, %c0_93, %c0_94] : memref<3x32x32xf32, #tpu.memory_space<vmem>>, vector<1x32x32xf32>
    %116 = vector.shape_cast %115 : vector<1x32x32xf32> to vector<32x32xf32>
    %cst_95 = arith.constant dense<0.000000e+00> : vector<16x32xf32>
    %117 = tpu.matmul %114, %116, %cst_95 {dimension_numbers = #tpu.dot_dimension_numbers<[1], [0], [0], [1], [0, 0, 1, 1], [], []>} : vector<16x32xf32>, vector<32x32xf32>, vector<16x32xf32> -> vector<16x32xf32>
    %c2_96 = arith.constant 2 : index
    %c0_97 = arith.constant 0 : index
    %c0_98 = arith.constant 0 : index
    %118 = vector.load %arg11[%c2_96, %c0_97, %c0_98] : memref<3x1x32xf32, #tpu.memory_space<vmem>>, vector<1x1x32xf32>
    %119 = vector.shape_cast %118 : vector<1x1x32xf32> to vector<1x32xf32>
    %120 = vector.broadcast %119 : vector<1x32xf32> to vector<16x32xf32>
    %121 = arith.addf %117, %120 : vector<16x32xf32>
    %122 = arith.addf %83, %121 : vector<16x32xf32>
    %cst_99 = arith.constant 0.000000e+00 : f32
    %123 = vector.broadcast %cst_99 : f32 to vector<16x32xf32>
    %124 = arith.maximumf %122, %123 : vector<16x32xf32>
    %c0_100 = arith.constant 0 : index
    %c0_101 = arith.constant 0 : index
    %125 = vector.load %arg12[%c0_100, %c0_101] : memref<32x8xf32, #tpu.memory_space<vmem>>, vector<32x8xf32>
    %cst_102 = arith.constant dense<0.000000e+00> : vector<16x8xf32>
    %126 = tpu.matmul %124, %125, %cst_102 {dimension_numbers = #tpu.dot_dimension_numbers<[1], [0], [0], [1], [0, 0, 1, 1], [], []>} : vector<16x32xf32>, vector<32x8xf32>, vector<16x8xf32> -> vector<16x8xf32>
    %c0_103 = arith.constant 0 : index
    %c0_104 = arith.constant 0 : index
    %127 = vector.load %arg13[%c0_103, %c0_104] : memref<1x8xf32, #tpu.memory_space<vmem>>, vector<1x8xf32>
    %128 = vector.broadcast %127 : vector<1x8xf32> to vector<16x8xf32>
    %129 = arith.addf %126, %128 : vector<16x8xf32>
    %c0_105 = arith.constant 0 : index
    %c0_106 = arith.constant 0 : index
    %c0_107 = arith.constant 0 : index
    %130 = vector.load %arg1[%c0_105, %c0_106, %c0_107] : memref<3x16x16xf32, #tpu.memory_space<vmem>>, vector<1x16x16xf32>
    %131 = vector.shape_cast %130 : vector<1x16x16xf32> to vector<16x16xf32>
    %cst_108 = arith.constant dense<0.000000e+00> : vector<16x32xf32>
    %132 = tpu.matmul %131, %124, %cst_108 {dimension_numbers = #tpu.dot_dimension_numbers<[1], [0], [0], [1], [0, 0, 1, 1], [], []>} : vector<16x16xf32>, vector<16x32xf32>, vector<16x32xf32> -> vector<16x32xf32>
    %133 = arith.addf %124, %132 : vector<16x32xf32>
    %c0_109 = arith.constant 0 : index
    %c0_110 = arith.constant 0 : index
    %c0_111 = arith.constant 0 : index
    %134 = vector.load %arg14[%c0_109, %c0_110, %c0_111] : memref<3x32x8xf32, #tpu.memory_space<vmem>>, vector<1x32x8xf32>
    %135 = vector.shape_cast %134 : vector<1x32x8xf32> to vector<32x8xf32>
    %cst_112 = arith.constant dense<0.000000e+00> : vector<16x8xf32>
    %136 = tpu.matmul %133, %135, %cst_112 {dimension_numbers = #tpu.dot_dimension_numbers<[1], [0], [0], [1], [0, 0, 1, 1], [], []>} : vector<16x32xf32>, vector<32x8xf32>, vector<16x8xf32> -> vector<16x8xf32>
    %c0_113 = arith.constant 0 : index
    %c0_114 = arith.constant 0 : index
    %c0_115 = arith.constant 0 : index
    %137 = vector.load %arg15[%c0_113, %c0_114, %c0_115] : memref<3x1x8xf32, #tpu.memory_space<vmem>>, vector<1x1x8xf32>
    %138 = vector.shape_cast %137 : vector<1x1x8xf32> to vector<1x8xf32>
    %139 = vector.broadcast %138 : vector<1x8xf32> to vector<16x8xf32>
    %140 = arith.addf %136, %139 : vector<16x8xf32>
    %c0_116 = arith.constant 0 : index
    %c0_117 = arith.constant 0 : index
    %c0_118 = arith.constant 0 : index
    %141 = vector.load %arg19[%c0_116, %c0_117, %c0_118] : memref<3x1x8xf32, #tpu.memory_space<vmem>>, vector<1x1x8xf32>
    %142 = vector.shape_cast %141 : vector<1x1x8xf32> to vector<1x8xf32>
    %cst_119 = arith.constant 9.99999974E-6 : f32
    %143 = vector.broadcast %cst_119 : f32 to vector<1x8xf32>
    %144 = arith.addf %142, %143 : vector<1x8xf32>
    %145 = math.rsqrt %144 : vector<1x8xf32>
    %c0_120 = arith.constant 0 : index
    %c0_121 = arith.constant 0 : index
    %c0_122 = arith.constant 0 : index
    %146 = vector.load %arg18[%c0_120, %c0_121, %c0_122] : memref<3x1x8xf32, #tpu.memory_space<vmem>>, vector<1x1x8xf32>
    %147 = vector.shape_cast %146 : vector<1x1x8xf32> to vector<1x8xf32>
    %148 = vector.broadcast %147 : vector<1x8xf32> to vector<16x8xf32>
    %149 = arith.subf %140, %148 : vector<16x8xf32>
    %c0_123 = arith.constant 0 : index
    %c0_124 = arith.constant 0 : index
    %c0_125 = arith.constant 0 : index
    %150 = vector.load %arg16[%c0_123, %c0_124, %c0_125] : memref<3x1x8xf32, #tpu.memory_space<vmem>>, vector<1x1x8xf32>
    %151 = vector.shape_cast %150 : vector<1x1x8xf32> to vector<1x8xf32>
    %152 = arith.mulf %151, %145 : vector<1x8xf32>
    %153 = vector.broadcast %152 : vector<1x8xf32> to vector<16x8xf32>
    %154 = arith.mulf %149, %153 : vector<16x8xf32>
    %c0_126 = arith.constant 0 : index
    %c0_127 = arith.constant 0 : index
    %c0_128 = arith.constant 0 : index
    %155 = vector.load %arg17[%c0_126, %c0_127, %c0_128] : memref<3x1x8xf32, #tpu.memory_space<vmem>>, vector<1x1x8xf32>
    %156 = vector.shape_cast %155 : vector<1x1x8xf32> to vector<1x8xf32>
    %157 = vector.broadcast %156 : vector<1x8xf32> to vector<16x8xf32>
    %158 = arith.addf %154, %157 : vector<16x8xf32>
    %cst_129 = arith.constant 0.000000e+00 : f32
    %159 = vector.broadcast %cst_129 : f32 to vector<16x8xf32>
    %160 = arith.maximumf %158, %159 : vector<16x8xf32>
    %c0_130 = arith.constant 0 : index
    %c0_131 = arith.constant 0 : index
    %c0_132 = arith.constant 0 : index
    %161 = vector.load %arg20[%c0_130, %c0_131, %c0_132] : memref<3x8x8xf32, #tpu.memory_space<vmem>>, vector<1x8x8xf32>
    %162 = vector.shape_cast %161 : vector<1x8x8xf32> to vector<8x8xf32>
    %cst_133 = arith.constant dense<0.000000e+00> : vector<16x8xf32>
    %163 = tpu.matmul %160, %162, %cst_133 {dimension_numbers = #tpu.dot_dimension_numbers<[1], [0], [0], [1], [0, 0, 1, 1], [], []>} : vector<16x8xf32>, vector<8x8xf32>, vector<16x8xf32> -> vector<16x8xf32>
    %c0_134 = arith.constant 0 : index
    %c0_135 = arith.constant 0 : index
    %c0_136 = arith.constant 0 : index
    %164 = vector.load %arg21[%c0_134, %c0_135, %c0_136] : memref<3x1x8xf32, #tpu.memory_space<vmem>>, vector<1x1x8xf32>
    %165 = vector.shape_cast %164 : vector<1x1x8xf32> to vector<1x8xf32>
    %166 = vector.broadcast %165 : vector<1x8xf32> to vector<16x8xf32>
    %167 = arith.addf %163, %166 : vector<16x8xf32>
    %168 = arith.addf %129, %167 : vector<16x8xf32>
    %c1_137 = arith.constant 1 : index
    %c0_138 = arith.constant 0 : index
    %c0_139 = arith.constant 0 : index
    %169 = vector.load %arg1[%c1_137, %c0_138, %c0_139] : memref<3x16x16xf32, #tpu.memory_space<vmem>>, vector<1x16x16xf32>
    %170 = vector.shape_cast %169 : vector<1x16x16xf32> to vector<16x16xf32>
    %cst_140 = arith.constant dense<0.000000e+00> : vector<16x32xf32>
    %171 = tpu.matmul %170, %124, %cst_140 {dimension_numbers = #tpu.dot_dimension_numbers<[1], [0], [0], [1], [0, 0, 1, 1], [], []>} : vector<16x16xf32>, vector<16x32xf32>, vector<16x32xf32> -> vector<16x32xf32>
    %172 = arith.addf %124, %171 : vector<16x32xf32>
    %c1_141 = arith.constant 1 : index
    %c0_142 = arith.constant 0 : index
    %c0_143 = arith.constant 0 : index
    %173 = vector.load %arg14[%c1_141, %c0_142, %c0_143] : memref<3x32x8xf32, #tpu.memory_space<vmem>>, vector<1x32x8xf32>
    %174 = vector.shape_cast %173 : vector<1x32x8xf32> to vector<32x8xf32>
    %cst_144 = arith.constant dense<0.000000e+00> : vector<16x8xf32>
    %175 = tpu.matmul %172, %174, %cst_144 {dimension_numbers = #tpu.dot_dimension_numbers<[1], [0], [0], [1], [0, 0, 1, 1], [], []>} : vector<16x32xf32>, vector<32x8xf32>, vector<16x8xf32> -> vector<16x8xf32>
    %c1_145 = arith.constant 1 : index
    %c0_146 = arith.constant 0 : index
    %c0_147 = arith.constant 0 : index
    %176 = vector.load %arg15[%c1_145, %c0_146, %c0_147] : memref<3x1x8xf32, #tpu.memory_space<vmem>>, vector<1x1x8xf32>
    %177 = vector.shape_cast %176 : vector<1x1x8xf32> to vector<1x8xf32>
    %178 = vector.broadcast %177 : vector<1x8xf32> to vector<16x8xf32>
    %179 = arith.addf %175, %178 : vector<16x8xf32>
    %c1_148 = arith.constant 1 : index
    %c0_149 = arith.constant 0 : index
    %c0_150 = arith.constant 0 : index
    %180 = vector.load %arg19[%c1_148, %c0_149, %c0_150] : memref<3x1x8xf32, #tpu.memory_space<vmem>>, vector<1x1x8xf32>
    %181 = vector.shape_cast %180 : vector<1x1x8xf32> to vector<1x8xf32>
    %cst_151 = arith.constant 9.99999974E-6 : f32
    %182 = vector.broadcast %cst_151 : f32 to vector<1x8xf32>
    %183 = arith.addf %181, %182 : vector<1x8xf32>
    %184 = math.rsqrt %183 : vector<1x8xf32>
    %c1_152 = arith.constant 1 : index
    %c0_153 = arith.constant 0 : index
    %c0_154 = arith.constant 0 : index
    %185 = vector.load %arg18[%c1_152, %c0_153, %c0_154] : memref<3x1x8xf32, #tpu.memory_space<vmem>>, vector<1x1x8xf32>
    %186 = vector.shape_cast %185 : vector<1x1x8xf32> to vector<1x8xf32>
    %187 = vector.broadcast %186 : vector<1x8xf32> to vector<16x8xf32>
    %188 = arith.subf %179, %187 : vector<16x8xf32>
    %c1_155 = arith.constant 1 : index
    %c0_156 = arith.constant 0 : index
    %c0_157 = arith.constant 0 : index
    %189 = vector.load %arg16[%c1_155, %c0_156, %c0_157] : memref<3x1x8xf32, #tpu.memory_space<vmem>>, vector<1x1x8xf32>
    %190 = vector.shape_cast %189 : vector<1x1x8xf32> to vector<1x8xf32>
    %191 = arith.mulf %190, %184 : vector<1x8xf32>
    %192 = vector.broadcast %191 : vector<1x8xf32> to vector<16x8xf32>
    %193 = arith.mulf %188, %192 : vector<16x8xf32>
    %c1_158 = arith.constant 1 : index
    %c0_159 = arith.constant 0 : index
    %c0_160 = arith.constant 0 : index
    %194 = vector.load %arg17[%c1_158, %c0_159, %c0_160] : memref<3x1x8xf32, #tpu.memory_space<vmem>>, vector<1x1x8xf32>
    %195 = vector.shape_cast %194 : vector<1x1x8xf32> to vector<1x8xf32>
    %196 = vector.broadcast %195 : vector<1x8xf32> to vector<16x8xf32>
    %197 = arith.addf %193, %196 : vector<16x8xf32>
    %cst_161 = arith.constant 0.000000e+00 : f32
    %198 = vector.broadcast %cst_161 : f32 to vector<16x8xf32>
    %199 = arith.maximumf %197, %198 : vector<16x8xf32>
    %c1_162 = arith.constant 1 : index
    %c0_163 = arith.constant 0 : index
    %c0_164 = arith.constant 0 : index
    %200 = vector.load %arg20[%c1_162, %c0_163, %c0_164] : memref<3x8x8xf32, #tpu.memory_space<vmem>>, vector<1x8x8xf32>
    %201 = vector.shape_cast %200 : vector<1x8x8xf32> to vector<8x8xf32>
    %cst_165 = arith.constant dense<0.000000e+00> : vector<16x8xf32>
    %202 = tpu.matmul %199, %201, %cst_165 {dimension_numbers = #tpu.dot_dimension_numbers<[1], [0], [0], [1], [0, 0, 1, 1], [], []>} : vector<16x8xf32>, vector<8x8xf32>, vector<16x8xf32> -> vector<16x8xf32>
    %c1_166 = arith.constant 1 : index
    %c0_167 = arith.constant 0 : index
    %c0_168 = arith.constant 0 : index
    %203 = vector.load %arg21[%c1_166, %c0_167, %c0_168] : memref<3x1x8xf32, #tpu.memory_space<vmem>>, vector<1x1x8xf32>
    %204 = vector.shape_cast %203 : vector<1x1x8xf32> to vector<1x8xf32>
    %205 = vector.broadcast %204 : vector<1x8xf32> to vector<16x8xf32>
    %206 = arith.addf %202, %205 : vector<16x8xf32>
    %207 = arith.addf %168, %206 : vector<16x8xf32>
    %c2_169 = arith.constant 2 : index
    %c0_170 = arith.constant 0 : index
    %c0_171 = arith.constant 0 : index
    %208 = vector.load %arg1[%c2_169, %c0_170, %c0_171] : memref<3x16x16xf32, #tpu.memory_space<vmem>>, vector<1x16x16xf32>
    %209 = vector.shape_cast %208 : vector<1x16x16xf32> to vector<16x16xf32>
    %cst_172 = arith.constant dense<0.000000e+00> : vector<16x32xf32>
    %210 = tpu.matmul %209, %124, %cst_172 {dimension_numbers = #tpu.dot_dimension_numbers<[1], [0], [0], [1], [0, 0, 1, 1], [], []>} : vector<16x16xf32>, vector<16x32xf32>, vector<16x32xf32> -> vector<16x32xf32>
    %211 = arith.addf %124, %210 : vector<16x32xf32>
    %c2_173 = arith.constant 2 : index
    %c0_174 = arith.constant 0 : index
    %c0_175 = arith.constant 0 : index
    %212 = vector.load %arg14[%c2_173, %c0_174, %c0_175] : memref<3x32x8xf32, #tpu.memory_space<vmem>>, vector<1x32x8xf32>
    %213 = vector.shape_cast %212 : vector<1x32x8xf32> to vector<32x8xf32>
    %cst_176 = arith.constant dense<0.000000e+00> : vector<16x8xf32>
    %214 = tpu.matmul %211, %213, %cst_176 {dimension_numbers = #tpu.dot_dimension_numbers<[1], [0], [0], [1], [0, 0, 1, 1], [], []>} : vector<16x32xf32>, vector<32x8xf32>, vector<16x8xf32> -> vector<16x8xf32>
    %c2_177 = arith.constant 2 : index
    %c0_178 = arith.constant 0 : index
    %c0_179 = arith.constant 0 : index
    %215 = vector.load %arg15[%c2_177, %c0_178, %c0_179] : memref<3x1x8xf32, #tpu.memory_space<vmem>>, vector<1x1x8xf32>
    %216 = vector.shape_cast %215 : vector<1x1x8xf32> to vector<1x8xf32>
    %217 = vector.broadcast %216 : vector<1x8xf32> to vector<16x8xf32>
    %218 = arith.addf %214, %217 : vector<16x8xf32>
    %c2_180 = arith.constant 2 : index
    %c0_181 = arith.constant 0 : index
    %c0_182 = arith.constant 0 : index
    %219 = vector.load %arg19[%c2_180, %c0_181, %c0_182] : memref<3x1x8xf32, #tpu.memory_space<vmem>>, vector<1x1x8xf32>
    %220 = vector.shape_cast %219 : vector<1x1x8xf32> to vector<1x8xf32>
    %cst_183 = arith.constant 9.99999974E-6 : f32
    %221 = vector.broadcast %cst_183 : f32 to vector<1x8xf32>
    %222 = arith.addf %220, %221 : vector<1x8xf32>
    %223 = math.rsqrt %222 : vector<1x8xf32>
    %c2_184 = arith.constant 2 : index
    %c0_185 = arith.constant 0 : index
    %c0_186 = arith.constant 0 : index
    %224 = vector.load %arg18[%c2_184, %c0_185, %c0_186] : memref<3x1x8xf32, #tpu.memory_space<vmem>>, vector<1x1x8xf32>
    %225 = vector.shape_cast %224 : vector<1x1x8xf32> to vector<1x8xf32>
    %226 = vector.broadcast %225 : vector<1x8xf32> to vector<16x8xf32>
    %227 = arith.subf %218, %226 : vector<16x8xf32>
    %c2_187 = arith.constant 2 : index
    %c0_188 = arith.constant 0 : index
    %c0_189 = arith.constant 0 : index
    %228 = vector.load %arg16[%c2_187, %c0_188, %c0_189] : memref<3x1x8xf32, #tpu.memory_space<vmem>>, vector<1x1x8xf32>
    %229 = vector.shape_cast %228 : vector<1x1x8xf32> to vector<1x8xf32>
    %230 = arith.mulf %229, %223 : vector<1x8xf32>
    %231 = vector.broadcast %230 : vector<1x8xf32> to vector<16x8xf32>
    %232 = arith.mulf %227, %231 : vector<16x8xf32>
    %c2_190 = arith.constant 2 : index
    %c0_191 = arith.constant 0 : index
    %c0_192 = arith.constant 0 : index
    %233 = vector.load %arg17[%c2_190, %c0_191, %c0_192] : memref<3x1x8xf32, #tpu.memory_space<vmem>>, vector<1x1x8xf32>
    %234 = vector.shape_cast %233 : vector<1x1x8xf32> to vector<1x8xf32>
    %235 = vector.broadcast %234 : vector<1x8xf32> to vector<16x8xf32>
    %236 = arith.addf %232, %235 : vector<16x8xf32>
    %cst_193 = arith.constant 0.000000e+00 : f32
    %237 = vector.broadcast %cst_193 : f32 to vector<16x8xf32>
    %238 = arith.maximumf %236, %237 : vector<16x8xf32>
    %c2_194 = arith.constant 2 : index
    %c0_195 = arith.constant 0 : index
    %c0_196 = arith.constant 0 : index
    %239 = vector.load %arg20[%c2_194, %c0_195, %c0_196] : memref<3x8x8xf32, #tpu.memory_space<vmem>>, vector<1x8x8xf32>
    %240 = vector.shape_cast %239 : vector<1x8x8xf32> to vector<8x8xf32>
    %cst_197 = arith.constant dense<0.000000e+00> : vector<16x8xf32>
    %241 = tpu.matmul %238, %240, %cst_197 {dimension_numbers = #tpu.dot_dimension_numbers<[1], [0], [0], [1], [0, 0, 1, 1], [], []>} : vector<16x8xf32>, vector<8x8xf32>, vector<16x8xf32> -> vector<16x8xf32>
    %c2_198 = arith.constant 2 : index
    %c0_199 = arith.constant 0 : index
    %c0_200 = arith.constant 0 : index
    %242 = vector.load %arg21[%c2_198, %c0_199, %c0_200] : memref<3x1x8xf32, #tpu.memory_space<vmem>>, vector<1x1x8xf32>
    %243 = vector.shape_cast %242 : vector<1x1x8xf32> to vector<1x8xf32>
    %244 = vector.broadcast %243 : vector<1x8xf32> to vector<16x8xf32>
    %245 = arith.addf %241, %244 : vector<16x8xf32>
    %246 = arith.addf %207, %245 : vector<16x8xf32>
    %c0_201 = arith.constant 0 : index
    %c0_202 = arith.constant 0 : index
    %247 = vector.load %arg22[%c0_201, %c0_202] : memref<16x8xf32, #tpu.memory_space<vmem>>, vector<16x8xf32>
    tpu.vector_store %arg22[%c0_201, %c0_202], %246 {strides = array<i32>} : memref<16x8xf32, #tpu.memory_space<vmem>>, vector<16x8xf32>,
    return
  }
}

</mosaic_0001>

<bundles_post_ra>
// kernel: gcn_forward.1
= control target key start
LH: loop header
LB: loop body
LE: loop exit
PB: predicated region body
PF: predicated region fallthrough
CT: control target
= control target key end

     0   :  { %s1950_s0 = inlined_call_operand.vmem [shape: f32[16,8], index: 0, kind: input, shape index: {}]   ;;  %s1951_s1 = inlined_call_operand.hbm [shape: f32[3,16,16], index: 1, kind: input, shape index: {}]   ;;  %s1952_s2 = inlined_call_operand.vmem [shape: f32[8,32], index: 2, kind: input, shape index: {}]   ;;  %s1953_s3 = inlined_call_operand.hbm [shape: f32[1,32], index: 3, kind: input, shape index: {}]   ;;  %s1954_s4 = inlined_call_operand.vmem [shape: f32[3,8,32], index: 4, kind: input, shape index: {}]   ;;  %s1955_s5 = inlined_call_operand.hbm [shape: f32[3,1,32], index: 5, kind: input, shape index: {}]   ;;  %s1956_s6 = inlined_call_operand.vmem [shape: f32[3,1,32], index: 6, kind: input, shape index: {}]   ;;  %s1957_s7 = inlined_call_operand.hbm [shape: f32[3,1,32], index: 7, kind: input, shape index: {}]   ;;  %s1958_s8 = inlined_call_operand.hbm [shape: f32[3,1,32], index: 8, kind: input, shape index: {}]   ;;  %s1959_s9 = inlined_call_operand.vmem [shape: f32[3,1,32], index: 9, kind: input, shape index: {}]   ;;  %s1960_s10 = inlined_call_operand.vmem [shape: f32[3,32,32], index: 10, kind: input, shape index: {}]   ;;  %s1961_s11 = inlined_call_operand.hbm [shape: f32[3,1,32], index: 11, kind: input, shape index: {}]   ;;  %s1962_s12 = inlined_call_operand.vmem [shape: f32[32,8], index: 12, kind: input, shape index: {}]   ;;  %s1963_s13 = inlined_call_operand.vmem [shape: f32[1,8], index: 13, kind: input, shape index: {}]   ;;  %s1964_s14 = inlined_call_operand.vmem [shape: f32[3,32,8], index: 14, kind: input, shape index: {}]   ;;  %s1965_s15 = inlined_call_operand.vmem [shape: f32[3,1,8], index: 15, kind: input, shape index: {}]   ;;  %s1966_s16 = inlined_call_operand.vmem [shape: f32[3,1,8], index: 16, kind: input, shape index: {}]   ;;  %s1967_s17 = inlined_call_operand.hbm [shape: f32[3,1,8], index: 17, kind: input, shape index: {}]   ;;  %s1968_s18 = inlined_call_operand.hbm [shape: f32[3,1,8], index: 18, kind: input, shape index: {}]   ;;  %s1969_s19 = inlined_call_operand.vmem [shape: f32[3,1,8], index: 19, kind: input, shape index: {}]   ;;  %s1970_s20 = inlined_call_operand.vmem [shape: f32[3,8,8], index: 20, kind: input, shape index: {}]   ;;  %s1971_s21 = inlined_call_operand.hbm [shape: f32[3,1,8], index: 21, kind: input, shape index: {}]   ;;  %s1972_s22 = inlined_call_operand.vmem [shape: f32[16,8], index: 22, kind: output, shape index: {}]  }
   0x1   :  { %1976 = sst [smem:[#allocation21_spill]] %s1950_s0 }
   0x2   :  { %1977 = sst [smem:[#allocation22_spill]] %s1951_s1 }
   0x3   :  { %1978 = sst [smem:[#allocation23_spill]] %s1952_s2 }
   0x4   :  { %1979 = sst [smem:[#allocation24_spill]] %s1953_s3 }
   0x5   :  { %1980 = sst [smem:[#allocation25_spill]] %s1954_s4 }
   0x6   :  { %1981 = sst [smem:[#allocation26_spill]] %s1955_s5 }
   0x7   :  { %1982 = sst [smem:[#allocation27_spill]] %s1956_s6 }
   0x8   :  { %27 = vsyncpa [#allocation3], 0 }
   0x9   :  { %28 = vsyncpa [#allocation5], 0 }
   0xa   :  { %29 = vsyncpa [#allocation8], 0 }
   0xb   :  { %30 = vsyncpa [#allocation11], 0  ;;  %s1983_s29 = sld [smem:[#allocation24_spill]] }
  0x11   :  { %s54_s30 = sshll.u32 %s1983_s29, 4  ;;  %s55_s30 = int_to_ptr.hbm [resolvable:$true] %s54_s30 }
  0x12   :  { %31 = vsyncpa [#allocation14], 0  ;;  %s1489_s4 = smov [#allocation4]   ;;  %s81_s5 = sshll.u32 %s1957_s7, 4  ;;  %s82_s5 = int_to_ptr.hbm [resolvable:$true] %s81_s5 }
  0x13   :  { %s56_s0 = sshll.u32 %s1489_s4, 4  ;;  %s1490_s24 = smov [#allocation7]   ;;  %s57_s0 = int_to_ptr.vmem [resolvable:$true] %s56_s0 }
  0x14   :  { %59 = dma.hbm_to_vmem [thread:$0]  %s55_s30, 16, %s57_s0, [#allocation5]  }
  0x15   :  { %s83_s6 = sshll.u32 %s1490_s24, 4  ;;  %s111_s2 = sshll.u32 %s1961_s11, 4  ;;  %s84_s6 = int_to_ptr.vmem [resolvable:$true] %s83_s6  ;;  %s112_s2 = int_to_ptr.hbm [resolvable:$true] %s111_s2 }
  0x16   :  { %s1491_s27 = smov 16   ;;  %s1492_s3 = smov 1  }
  0x17   :  { %89 = dma.hbm_to_vmem [thread:$0]  %s82_s5, 48, %s84_s6, [#allocation8], %s1491_s27, %s1491_s27, %s1492_s3  }
  0x18   :  { %s147_s30 = sshll.u32 %s1968_s18, 4  ;;  %s1493_s7 = smov [#allocation10]   ;;  %s148_s30 = int_to_ptr.hbm [resolvable:$true] %s147_s30 }
  0x19   :  { %s113_s4 = sshll.u32 %s1493_s7, 4  ;;  %s1494_s11 = smov [#allocation13]   ;;  %s114_s4 = int_to_ptr.vmem [resolvable:$true] %s113_s4 }
  0x1a   :  { %119 = dma.hbm_to_vmem [thread:$0]  %s112_s2, 48, %s114_s4, [#allocation11], %s1491_s27, %s1491_s27, %s1492_s3  }
  0x1b   :  { %s149_s0 = sshll.u32 %s1494_s11, 4  ;;  %s1984_s24 = sld [smem:[#allocation22_spill]]  ;;  %s150_s0 = int_to_ptr.vmem [resolvable:$true] %s149_s0 }
  0x1c   :  { %155 = dma.hbm_to_vmem [thread:$0]  %s148_s30, 48, %s150_s0, [#allocation14], %s1491_s27, %s1491_s27, %s1492_s3  }
  0x1d   :  { %s1495_s18 = smov [#allocation2]   ;;  %s1985_s28 = sld [smem:[#allocation26_spill]] }
  0x1e   :  { %s40_s5 = sshll.u32 %s1495_s18, 4  ;;  %s1496_s2 = smov 128   ;;  %s41_s5 = int_to_ptr.vmem [resolvable:$true] %s40_s5 }
  0x1f   :  { %s1497_s7 = smov 8   ;;  %s1498_s4 = smov [#allocation6]  }
  0x20   :  { %s68_s11 = sshll.u32 %s1498_s4, 4  ;;  %s134_s18 = sshll.u32 %s1967_s17, 4  ;;  %s69_s11 = int_to_ptr.vmem [resolvable:$true] %s68_s11  ;;  %s135_s18 = int_to_ptr.hbm [resolvable:$true] %s134_s18 }
  0x21   :  { %s38_s25 = sshll.u32 %s1984_s24, 4  ;;  %s94_s24 = sshll.u32 %s1958_s8, 4  ;;  %s39_s25 = int_to_ptr.hbm [resolvable:$true] %s38_s25  ;;  %s95_s24 = int_to_ptr.hbm [resolvable:$true] %s94_s24 }
  0x22   :  { %46 = dma.hbm_to_vmem [thread:$0]  %s39_s25, 768, %s41_s5, [#allocation3], %s1496_s2, %s1496_s2, %s1497_s7  }
  0x23   :  { %s66_s29 = sshll.u32 %s1985_s28, 4  ;;  %s1499_s6 = smov [#allocation9]   ;;  %s67_s29 = int_to_ptr.hbm [resolvable:$true] %s66_s29 }
  0x24   :  { %74 = dma.hbm_to_vmem [thread:$0]  %s67_s29, 48, %s69_s11, [#allocation5], %s1491_s27, %s1491_s27, %s1492_s3  }
  0x25   :  { %s96_s26 = sshll.u32 %s1499_s6, 4  ;;  %s1500_s25 = smov [#allocation12]   ;;  %s97_s26 = int_to_ptr.vmem [resolvable:$true] %s96_s26 }
  0x26   :  { %102 = dma.hbm_to_vmem [thread:$0]  %s95_s24, 48, %s97_s26, [#allocation8], %s1491_s27, %s1491_s27, %s1492_s3  }
  0x27   :  { %s136_s8 = sshll.u32 %s1500_s25, 4  ;;  %s164_s2 = sshll.u32 %s1971_s21, 4  ;;  %s137_s8 = int_to_ptr.vmem [resolvable:$true] %s136_s8  ;;  %s165_s2 = int_to_ptr.hbm [resolvable:$true] %s164_s2 }
  0x28   :  { %142 = dma.hbm_to_vmem [thread:$0]  %s135_s18, 48, %s137_s8, [#allocation11], %s1491_s27, %s1491_s27, %s1492_s3  }
  0x29   :  { %s1501_s17 = smov [#allocation15]  }
  0x2a   :  { %s166_s29 = sshll.u32 %s1501_s17, 4  ;;  %s167_s29 = int_to_ptr.vmem [resolvable:$true] %s166_s29 }
  0x2b   :  { %172 = dma.hbm_to_vmem [thread:$0]  %s165_s2, 48, %s167_s29, [#allocation14], %s1491_s27, %s1491_s27, %s1492_s3  }
  0x2c   :  { %1479 = dma.done.wait [#allocation3], 768  }
  0x2d   :  { %1480 = vsyncadd [#allocation3], 4294966528 }
  0x2e   :  { %1481 = dma.done.wait [#allocation5], 64  }
  0x2f   :  { %1482 = vsyncadd [#allocation5], 4294967232 }
  0x30   :  { %1483 = dma.done.wait [#allocation8], 96  }
  0x31   :  { %1484 = vsyncadd [#allocation8], 4294967200 }
  0x32   :  { %1485 = dma.done.wait [#allocation11], 96  }
  0x33   :  { %1486 = vsyncadd [#allocation11], 4294967200 }
  0x34   :  { %1487 = dma.done.wait [#allocation14], 96  }
  0x35   :  { %1488 = vsyncadd [#allocation14], 4294967200  ;;  %vm216_vm0 = vcmask 64512   ;;  %s1986_s4 = sld [smem:[#allocation21_spill]]  ;;  %v1679_v3 = vld [vmem:[#allocation2] sm:$0xff]  ;;  %vm248_vm1 = vcmask 130048  }
  0x36   :  { %s1987_s1 = sld [smem:[#allocation23_spill]]  ;;  %v1688_v4 = vld [vmem:[#allocation2 + $0x8] sm:$0xff]  ;;  %v1694_v5 = vld [vmem:[#allocation2 + $0x10] sm:$0xff]  ;;  %v1698_v6 = vld [vmem:[#allocation2 + $0x18] sm:$0xff]  ;;  %vm355_vm8 = vcmask 261120  }
  0x37   :  { %s1988_s0 = sld [smem:[#allocation25_spill]]  ;;  %v314_v19 = vld [vmem:[%s1959_s9] sm:$0x1]  ;;  %v350_v22 = vld [vmem:[%s1960_s10 + $0x18] sm:$0xff]  ;;  %v349_v23 = vld [vmem:[%s1960_s10 + $0x10] sm:$0xff] }
  0x38   :  { %v315_v20 = vadd.f32 1e-05, %v314_v19  ;;  %374 = vmatpush.msra.mxu3 %v350_v22  ;;  %v1155_v25 = vld [vmem:[%s1959_s9 + $0x1] sm:$0x1]  ;;  %v348_v26 = vld [vmem:[%s1960_s10 + $0x8] sm:$0xff]  ;;  %v1160_v33 = vld [vmem:[%s1960_s10 + $0x38] sm:$0xff] }
  0x39   :  { %v347_v27 = vld [vmem:[%s1960_s10] sm:$0xff]  ;;  %v459_v28 = vadd.f32 1e-05, %v1155_v25  ;;  %v1159_v34 = vld [vmem:[%s1960_s10 + $0x30] sm:$0xff]  ;;  %v1158_v37 = vld [vmem:[%s1960_s10 + $0x28] sm:$0xff]  ;;  %s1989_s8 = sld [smem:[#allocation27_spill]] }
  0x3a   :  { %1251 = vrsqrt.f32 %v315_v20  ;;  %375 = vmatpush.msra.mxu3 %v349_v23  ;;  %vm322_vm2 = vweird.f32 %v315_v20  ;;  %v1157_v38 = vld [vmem:[%s1960_s10 + $0x20] sm:$0xff]  ;;  %v1226_v42 = vld [vmem:[#allocation6] ss:$0 sm:$0xff]  ;;  %v1227_v45 = vld [vmem:[#allocation9] ss:$0 sm:$0xff] }
  0x3b   :  { %v1668_v0 = vld [vmem:[%s1986_s4 + $0x8] sm:$0xff]  ;;  %v1676_v2 = vld [vmem:[%s1986_s4] sm:$0xff]  ;;  %1253 = vrsqrt.f32 %v459_v28  ;;  %v1228_v51 = vld [vmem:[#allocation7] ss:$0 sm:$0xff]  ;;  %vm466_vm5 = vweird.f32 %v459_v28 }
  0x3c   :  { %v211_v1 = vld [vmem:[%s1987_s1] sm:$0xff]  ;;  %269 = vmatpush.msra.mxu1 %v1668_v0  ;;  %376 = vmatpush.msra.mxu3 %v348_v26  ;;  %v1229_v62 = vld [vmem:[#allocation6 + $0x1] ss:$0 sm:$0xff]  ;;  %v1765_v25 = vld [vmem:[#allocation2 + $0x28] sm:$0xff] }
  0x3d   :  { %238 = vmatpush.msra.mxu0 %v211_v1  ;;  %v280_v7 = vld [vmem:[%s1988_s0] sm:$0xff]  ;;  %v1152_v8 = vld [vmem:[%s1988_s0 + $0x8] sm:$0xff]  ;;  %v1230_v1 = vld [vmem:[#allocation9 + $0x1] ss:$0 sm:$0xff] }
  0x3e   :  { %1142 = vmatmul.msk.f32.vlgmr.msra.gmra.mxu0 %vm216_vm0, %v1676_v2  ;;  %270 = vmatpush.msra.mxu1 %v1676_v2  ;;  %v1760_v19 = vld [vmem:[#allocation2 + $0x20] sm:$0xff] }
  0x3f   :  { %410 = vmatpush.msrb.mxu0 %v1668_v0  ;;  %1144 = vmatmul.msk.f32.vlgmr.msra.gmra.mxu1 %vm248_vm1, %v1679_v3  ;;  %v332_v40 = vld [vmem:[%s1989_s8] sm:$0x1]  ;;  %v1156_v59 = vld [vmem:[%s1989_s8 + $0x1] sm:$0x1] }
  0x40   :  { %306 = vmatpush.msra.mxu2 %v280_v7  ;;  %v1252_v21 = vpop.eup %1251  ;;  %377 = vmatpush.msra.mxu3 %v347_v27  ;;  %v1165_v27 = vld [vmem:[%s1988_s0 + $0x10] sm:$0xff] }
  0x41   :  { %411 = vmatpush.msrb.mxu0 %v1676_v2  ;;  %v317_v24 = vmul.f32 %v1252_v21, %v315_v20  ;;  %v1254_v32 = vpop.eup %1253  ;;  %vm323_vm3 = vweird.f32 %v1252_v21  ;;  %522 = vmatpush.msrb.mxu1 %v1160_v33 }
  0x42   :  { %449 = vmatpush.msrb.mxu2 %v1152_v8  ;;  %558 = vmatpush.msrb.mxu3 %v1668_v0  ;;  %v461_v36 = vmul.f32 %v1254_v32, %v459_v28  ;;  %vm324_vm4 = vmor %vm322_vm2, %vm323_vm3  ;;  %vm467_vm6 = vweird.f32 %v1254_v32  ;;  %v1225_v28 = vld [vmem:[#allocation4] ss:$0 sm:$0xff] }
  0x43   :  { %v318_v29 = vmul.f32 %v1252_v21, %v317_v24  ;;  %523 = vmatpush.msrb.mxu1 %v1159_v34  ;;  %vm468_vm7 = vmor %vm466_vm5, %vm467_vm6  ;;  %597 = vmatpush.msra.mxu0 %v1165_v27 }
  0x44   :  { %559 = vmatpush.msrb.mxu3 %v1676_v2  ;;  %v462_v41 = vmul.f32 %v1254_v32, %v461_v36 }
  0x45   :  { %v319_v30 = vmul.f32 0.5, %v318_v29  ;;  %524 = vmatpush.msrb.mxu1 %v1158_v37  ;;  %v1232_v29 = vld [vmem:[#allocation10] ss:$0 sm:$0xff] }
  0x46   :  { %1143 = vmatmul.msk.f32.gmra.mxu0 %vm216_vm0, %v1668_v0  ;;  %v463_v44 = vmul.f32 0.5, %v462_v41 }
  0x47   :  { %1145 = vmatmul.msk.f32.gmra.mxu1 %vm248_vm1, %v1688_v4  ;;  %v320_v31 = vsub.f32 1.5, %v319_v30 }
  0x48   :  { %525 = vmatpush.msrb.mxu1 %v1157_v38  ;;  %v464_v49 = vsub.f32 1.5, %v463_v44 }
  0x49   :  { %v321_v35 = vmul.f32 %v1252_v21, %v320_v31 }
  0x4a   :  { %v465_v53 = vmul.f32 %v1254_v32, %v464_v49 }
  0x4b   :  { %v325_v39 = vsel %vm324_vm4, %v1252_v21, %v321_v35 }
  0x4c   :  { %v333_v43 = vmul.f32 %v332_v40, %v325_v39  ;;  %v469_v58 = vsel %vm468_vm7, %v1254_v32, %v465_v53 }
  0x4d   :  { %v479_v63 = vmul.f32 %v1156_v59, %v469_v58  ;;  %v1236_v59 = vld [vmem:[#allocation7 + $0x2] ss:$0 sm:$0xff] }
  0x4e   :  { %1150 = vmatmul.msk.f32.vlgmr.msrb.gmra.mxu0 %vm248_vm1, %v1694_v5  ;;  %v335_v48 = vperm.slane %v333_v43, 0  ;;  %v1173_v43 = vld [vmem:[%s1960_s10 + $0x58] sm:$0xff] }
  0x56   :  { %1151 = vmatmul.msk.f32.gmra.mxu0 %vm248_vm1, %v1698_v6 }
  0xbb   :  { %v1708_v9 = vpop.f32.mrf.mxu0 }
  0xbc   :  { %v272_v10 = vpop.f32.mrf.mxu1  ;;  %v241_v31 = vadd.f32 %v1225_v28, %v1708_v9  ;;  %v1168_v9 = vld [vmem:[%s1959_s9 + $0x2] sm:$0x1] }
  0xbd   :  { %v278_v11 = vadd.f32 %v272_v10, %v1676_v2 }
  0xbf   :  { %1146 = vmatmul.msk.f32.vlgmr.msra.gmra.mxu2 %vm216_vm0, %v278_v11  ;;  %v481_v11 = vperm.slane %v479_v63, 0 }
  0xc0   :  { %670 = vmatpush.msra.mxu2 %v1173_v43 }
  0xc3   :  { %v1712_v12 = vpop.f32.mrf.mxu0 }
  0xc4   :  { %v275_v13 = vpop.f32.mrf.mxu1  ;;  %v244_v35 = vadd.f32 %v1225_v28, %v1712_v12 }
  0xc5   :  { %v279_v14 = vadd.f32 %v275_v13, %v1668_v0 }
  0xc7   :  { %1147 = vmatmul.msk.f32.gmra.mxu2 %vm216_vm0, %v279_v14 }
  0xcb   :  { %v413_v15 = vpop.f32.mrf.mxu0 }
  0xcc   :  { %v419_v16 = vadd.f32 %v413_v15, %v1676_v2  ;;  %v1231_v15 = vld [vmem:[#allocation7 + $0x1] ss:$0 sm:$0xff] }
  0xcf   :  { %1153 = vmatmul.msk.f32.vlgmr.msrb.gmra.mxu2 %vm216_vm0, %v419_v16 }
  0xd3   :  { %v416_v17 = vpop.f32.mrf.mxu0 }
  0xd4   :  { %v420_v18 = vadd.f32 %v416_v17, %v1668_v0 }
  0xd7   :  { %1154 = vmatmul.msk.f32.gmra.mxu2 %vm216_vm0, %v420_v18 }
 0x142   :  { %v308_v46 = vpop.f32.mrf.mxu2 }
 0x143   :  { %v309_v47 = vadd.f32 %v1226_v42, %v308_v46 }
 0x145   :  { %v330_v50 = vsub.f32 %v309_v47, %v1227_v45 }
 0x147   :  { %v337_v52 = vmul.f32 %v335_v48, %v330_v50 }
 0x149   :  { %v343_v54 = vadd.f32 %v1228_v51, %v337_v52  ;;  %v1234_v52 = vld [vmem:[#allocation6 + $0x2] ss:$0 sm:$0xff] }
 0x14a   :  { %v311_v55 = vpop.f32.mrf.mxu2 }
 0x14b   :  { %v312_v56 = vadd.f32 %v1226_v42, %v311_v55  ;;  %v345_v57 = vmax.f32 %v343_v54, 0.0  ;;  %v607_v42 = vadd.f32 1e-05, %v1168_v9  ;;  %v1235_v54 = vld [vmem:[#allocation9 + $0x2] ss:$0 sm:$0xff] }
 0x14d   :  { %v331_v60 = vsub.f32 %v312_v56, %v1227_v45  ;;  %1148 = vmatmul.msk.f32.vlgmr.msra.gmra.mxu3 %vm355_vm8, %v345_v57  ;;  %1255 = vrsqrt.f32 %v607_v42  ;;  %v1170_v45 = vld [vmem:[%s1960_s10 + $0x40] sm:$0xff]  ;;  %vm614_vm9 = vweird.f32 %v607_v42 }
 0x14f   :  { %v338_v61 = vmul.f32 %v335_v48, %v331_v60 }
 0x151   :  { %v344_v7 = vadd.f32 %v1228_v51, %v338_v61  ;;  %v1169_v51 = vld [vmem:[%s1989_s8 + $0x2] sm:$0x1] }
 0x152   :  { %v451_v8 = vpop.f32.mrf.mxu2 }
 0x153   :  { %v452_v10 = vadd.f32 %v1229_v62, %v451_v8  ;;  %v346_v13 = vmax.f32 %v344_v7, 0.0  ;;  %v1256_v12 = vpop.eup %1255 }
 0x154   :  { %v609_v44 = vmul.f32 %v1256_v12, %v607_v42  ;;  %vm615_vm10 = vweird.f32 %v1256_v12 }
 0x155   :  { %v475_v14 = vsub.f32 %v452_v10, %v1230_v1  ;;  %1149 = vmatmul.msk.f32.gmra.mxu3 %vm355_vm8, %v346_v13  ;;  %vm616_vm11 = vmor %vm614_vm9, %vm615_vm10  ;;  %v688_v13 = vld [vmem:[%s1962_s12 + $0x18] sm:$0xff] }
 0x156   :  { %v610_v46 = vmul.f32 %v1256_v12, %v609_v44  ;;  %711 = vmatpush.msra.mxu1 %v688_v13  ;;  %v1240_v13 = vld [vmem:[#allocation13] ss:$0 sm:$0xff] }
 0x157   :  { %v483_v16 = vmul.f32 %v481_v11, %v475_v14  ;;  %v687_v14 = vld [vmem:[%s1962_s12 + $0x10] sm:$0xff] }
 0x158   :  { %v611_v47 = vmul.f32 0.5, %v610_v46  ;;  %712 = vmatpush.msra.mxu1 %v687_v14  ;;  %v784_v46 = vld [vmem:[%s1969_s19] sm:$0x1] }
 0x159   :  { %v490_v17 = vadd.f32 %v1231_v15, %v483_v16  ;;  %v685_v16 = vld [vmem:[%s1962_s12] sm:$0xff] }
 0x15a   :  { %v454_v18 = vpop.f32.mrf.mxu2  ;;  %v612_v48 = vsub.f32 1.5, %v611_v47  ;;  %v785_v47 = vadd.f32 1e-05, %v784_v46  ;;  %v1246_v46 = vld [vmem:[#allocation15] ss:$0 sm:$0xff] }
 0x15b   :  { %v492_v20 = vmax.f32 %v490_v17, 0.0  ;;  %v455_v21 = vadd.f32 %v1229_v62, %v454_v18  ;;  %v817_v17 = vld [vmem:[%s1970_s20] sm:$0xff] }
 0x15c   :  { %v613_v49 = vmul.f32 %v1256_v12, %v612_v48  ;;  %v1193_v48 = vld [vmem:[%s1969_s19 + $0x1] sm:$0x1]  ;;  %1257 = vrsqrt.f32 %v785_v47  ;;  %vm792_vm12 = vweird.f32 %v785_v47 }
 0x15d   :  { %v476_v22 = vsub.f32 %v455_v21, %v1230_v1  ;;  %1161 = vmatmul.msk.f32.vlgmr.msrb.gmra.mxu1 %vm355_vm8, %v492_v20  ;;  %1163 = vmatmul.msk.f32.vlgmr.msrb.gmra.mxu3 %vm248_vm1, %v1760_v19  ;;  %v1233_v20 = vld [vmem:[#allocation10 + $0x1] ss:$0 sm:$0xff] }
 0x15e   :  { %v617_v50 = vsel %vm616_vm11, %v1256_v12, %v613_v49  ;;  %v919_v49 = vadd.f32 1e-05, %v1193_v48 }
 0x15f   :  { %v484_v23 = vmul.f32 %v481_v11, %v476_v22  ;;  %v627_v53 = vmul.f32 %v1169_v51, %v617_v50  ;;  %v1237_v22 = vld [vmem:[#allocation10 + $0x2] ss:$0 sm:$0xff] }
 0x160   :  { %1259 = vrsqrt.f32 %v919_v49  ;;  %vm926_vm15 = vweird.f32 %v919_v49 }
 0x161   :  { %v491_v24 = vadd.f32 %v1231_v15, %v484_v23  ;;  %v629_v57 = vperm.slane %v627_v53, 0  ;;  %v686_v15 = vld [vmem:[%s1962_s12 + $0x8] sm:$0xff] }
 0x162   :  { %713 = vmatpush.msra.mxu1 %v686_v15  ;;  %v1258_v50 = vpop.eup %1257 }
 0x163   :  { %v493_v26 = vmax.f32 %v491_v24, 0.0  ;;  %v787_v51 = vmul.f32 %v1258_v50, %v785_v47  ;;  %vm793_vm13 = vweird.f32 %v1258_v50 }
 0x164   :  { %714 = vmatpush.msra.mxu1 %v685_v16  ;;  %vm794_vm14 = vmor %vm792_vm12, %vm793_vm13 }
 0x165   :  { %1162 = vmatmul.msk.f32.gmra.mxu1 %vm355_vm8, %v493_v26  ;;  %1164 = vmatmul.msk.f32.gmra.mxu3 %vm248_vm1, %v1765_v25  ;;  %v788_v53 = vmul.f32 %v1258_v50, %v787_v51 }
 0x1d0   :  { %v379_v30 = vpop.f32.mrf.mxu3 }
 0x1d1   :  { %v380_v32 = vadd.f32 %v1232_v29, %v379_v30 }
 0x1d3   :  { %v1774_v33 = vadd.f32 %v380_v32, %v241_v31 }
 0x1d8   :  { %v382_v34 = vpop.f32.mrf.mxu3 }
 0x1d9   :  { %v383_v36 = vadd.f32 %v1232_v29, %v382_v34 }
 0x1da   :  { %v527_v18 = vpop.f32.mrf.mxu1 }
 0x1db   :  { %v1777_v37 = vadd.f32 %v383_v36, %v244_v35  ;;  %v528_v21 = vadd.f32 %v1233_v20, %v527_v18 }
 0x1dd   :  { %v533_v24 = vadd.f32 %v528_v21, %v1774_v33  ;;  %v1189_v33 = vld [vmem:[%s1964_s14 + $0x38] sm:$0xff]  ;;  %v1241_v21 = vld [vmem:[#allocation12] ss:$0 sm:$0xff] }
 0x1e0   :  { %v561_v38 = vpop.f32.mrf.mxu3 }
 0x1e1   :  { %v567_v39 = vadd.f32 %v561_v38, %v1676_v2  ;;  %v1172_v2 = vld [vmem:[%s1960_s10 + $0x50] sm:$0xff]  ;;  %v1186_v38 = vld [vmem:[%s1964_s14 + $0x20] sm:$0xff] }
 0x1e2   :  { %671 = vmatpush.msra.mxu2 %v1172_v2  ;;  %v530_v27 = vpop.f32.mrf.mxu1 }
 0x1e3   :  { %1166 = vmatmul.msk.f32.vlgmr.msra.gmra.mxu0 %vm216_vm0, %v567_v39  ;;  %v531_v29 = vadd.f32 %v1233_v20, %v530_v27  ;;  %v747_v39 = vld [vmem:[%s1964_s14] sm:$0xff] }
 0x1e5   :  { %v534_v32 = vadd.f32 %v531_v29, %v1777_v37  ;;  %v750_v37 = vld [vmem:[%s1964_s14 + $0x18] sm:$0xff] }
 0x1e6   :  { %773 = vmatpush.msrb.mxu0 %v750_v37 }
 0x1e8   :  { %v564_v40 = vpop.f32.mrf.mxu3 }
 0x1e9   :  { %v568_v41 = vadd.f32 %v564_v40, %v1668_v0  ;;  %v1171_v0 = vld [vmem:[%s1960_s10 + $0x48] sm:$0xff] }
 0x1ea   :  { %672 = vmatpush.msra.mxu2 %v1171_v0 }
 0x1eb   :  { %1167 = vmatmul.msk.f32.gmra.mxu0 %vm216_vm0, %v568_v41 }
 0x1ec   :  { %673 = vmatpush.msra.mxu2 %v1170_v45 }
 0x1ee   :  { %843 = vmatpush.msrb.mxu2 %v817_v17  ;;  %v1242_v17 = vld [vmem:[%s1965_s15 + $0x1] ss:$0 sm:$0xff] }
 0x260   :  { %v599_v55 = vpop.f32.mrf.mxu0 }
 0x261   :  { %v600_v56 = vadd.f32 %v1234_v52, %v599_v55  ;;  %v789_v55 = vmul.f32 0.5, %v788_v53 }
 0x263   :  { %v623_v58 = vsub.f32 %v600_v56, %v1235_v54 }
 0x265   :  { %v631_v60 = vmul.f32 %v629_v57, %v623_v58  ;;  %v790_v58 = vsub.f32 1.5, %v789_v55 }
 0x267   :  { %v638_v61 = vadd.f32 %v1236_v59, %v631_v60  ;;  %v791_v60 = vmul.f32 %v1258_v50, %v790_v58 }
 0x268   :  { %v602_v62 = vpop.f32.mrf.mxu0 }
 0x269   :  { %v640_v63 = vmax.f32 %v638_v61, 0.0  ;;  %v603_v1 = vadd.f32 %v1234_v52, %v602_v62  ;;  %v1260_v52 = vpop.eup %1259  ;;  %v795_v62 = vsel %vm794_vm14, %v1258_v50, %v791_v60 }
 0x26a   :  { %vm927_vm2 = vweird.f32 %v1260_v52 }
 0x26b   :  { %v624_v7 = vsub.f32 %v603_v1, %v1235_v54  ;;  %1174 = vmatmul.msk.f32.vlgmr.msra.gmra.mxu2 %vm355_vm8, %v640_v63  ;;  %v921_v54 = vmul.f32 %v1260_v52, %v919_v49  ;;  %v802_v63 = vld [vmem:[%s1966_s16] sm:$0x1]  ;;  %vm928_vm3 = vmor %vm926_vm15, %vm927_vm2 }
 0x26d   :  { %v632_v8 = vmul.f32 %v629_v57, %v624_v7  ;;  %v922_v56 = vmul.f32 %v1260_v52, %v921_v54  ;;  %v1195_v57 = vld [vmem:[%s1970_s20 + $0x8] sm:$0xff]  ;;  %v1239_v7 = vld [vmem:[%s1965_s15] ss:$0 sm:$0xff] }
 0x26f   :  { %v639_v10 = vadd.f32 %v1236_v59, %v632_v8  ;;  %v923_v59 = vmul.f32 0.5, %v922_v56  ;;  %v803_v8 = vmul.f32 %v802_v63, %v795_v62 }
 0x271   :  { %v641_v11 = vmax.f32 %v639_v10, 0.0  ;;  %v924_v61 = vsub.f32 1.5, %v923_v59  ;;  %v805_v16 = vperm.slane %v803_v8, 0  ;;  %v1247_v8 = vld [vmem:[%s1965_s15 + $0x2] ss:$0 sm:$0xff] }
 0x273   :  { %1175 = vmatmul.msk.f32.gmra.mxu2 %vm355_vm8, %v641_v11  ;;  %v925_v1 = vmul.f32 %v1260_v52, %v924_v61  ;;  %v1194_v11 = vld [vmem:[%s1966_s16 + $0x1] sm:$0x1]  ;;  %v1209_v61 = vld [vmem:[%s1970_s20 + $0x10] sm:$0xff] }
 0x275   :  { %v929_v10 = vsel %vm928_vm3, %v1260_v52, %v925_v1 }
 0x276   :  { %v939_v18 = vmul.f32 %v1194_v11, %v929_v10  ;;  %v1248_v11 = vld [vmem:[#allocation13 + $0x2] ss:$0 sm:$0xff] }
 0x278   :  { %v941_v27 = vperm.slane %v939_v18, 0 }
 0x2ee   :  { %v675_v23 = vpop.f32.mrf.mxu2 }
 0x2ef   :  { %v676_v26 = vadd.f32 %v1237_v22, %v675_v23 }
 0x2f1   :  { %v681_v28 = vadd.f32 %v676_v26, %v533_v24 }
 0x2f3   :  { %v1819_v30 = vmax.f32 %v681_v28, 0.0 }
 0x2f5   :  { %1176 = vmatmul.msk.f32.vlgmr.msra.gmra.mxu1 %vm355_vm8, %v1819_v30 }
 0x2f6   :  { %v678_v31 = vpop.f32.mrf.mxu2 }
 0x2f7   :  { %v679_v34 = vadd.f32 %v1237_v22, %v678_v31  ;;  %v1243_v22 = vld [vmem:[#allocation13 + $0x1] ss:$0 sm:$0xff]  ;;  %v1244_v31 = vld [vmem:[#allocation12 + $0x1] ss:$0 sm:$0xff] }
 0x2f9   :  { %v682_v35 = vadd.f32 %v679_v34, %v534_v32 }
 0x2fb   :  { %v1824_v36 = vmax.f32 %v682_v35, 0.0 }
 0x2fd   :  { %1177 = vmatmul.msk.f32.gmra.mxu1 %vm355_vm8, %v1824_v36  ;;  %736 = vmatpush.msra.mxu3 %v1824_v36 }
 0x2fe   :  { %867 = vmatpush.msrb.mxu1 %v1824_v36  ;;  %1006 = vmatpush.msra.mxu2 %v1824_v36 }
 0x2ff   :  { %737 = vmatpush.msra.mxu3 %v1819_v30 }
 0x300   :  { %868 = vmatpush.msrb.mxu1 %v1819_v30  ;;  %1007 = vmatpush.msra.mxu2 %v1819_v30 }
 0x301   :  { %1178 = vmatmul.msk.f32.vlgmr.msra.gmra.mxu3 %vm248_vm1, %v1679_v3  ;;  %v1188_v3 = vld [vmem:[%s1964_s14 + $0x30] sm:$0xff] }
 0x302   :  { %906 = vmatpush.msrb.mxu3 %v1189_v33 }
 0x304   :  { %907 = vmatpush.msrb.mxu3 %v1188_v3 }
 0x305   :  { %1184 = vmatmul.msk.f32.vlgmr.msrb.gmra.mxu1 %vm248_vm1, %v1694_v5  ;;  %v1187_v5 = vld [vmem:[%s1964_s14 + $0x28] sm:$0xff] }
 0x306   :  { %908 = vmatpush.msrb.mxu3 %v1187_v5 }
 0x308   :  { %909 = vmatpush.msrb.mxu3 %v1186_v38 }
 0x309   :  { %1179 = vmatmul.msk.f32.gmra.mxu3 %vm248_vm1, %v1688_v4  ;;  %v749_v4 = vld [vmem:[%s1964_s14 + $0x10] sm:$0xff] }
 0x30a   :  { %774 = vmatpush.msrb.mxu0 %v749_v4  ;;  %1121 = vmatpush.msra.mxu3 %v1209_v61 }
 0x30d   :  { %1185 = vmatmul.msk.f32.gmra.mxu1 %vm248_vm1, %v1698_v6  ;;  %v748_v6 = vld [vmem:[%s1964_s14 + $0x8] sm:$0xff] }
 0x30e   :  { %775 = vmatpush.msrb.mxu0 %v748_v6 }
 0x310   :  { %776 = vmatpush.msrb.mxu0 %v747_v39 }
 0x312   :  { %982 = vmatpush.msra.mxu0 %v1195_v57 }
 0x372   :  { %v1866_v40 = vpop.f32.mrf.mxu1 }
 0x37a   :  { %v1868_v41 = vpop.f32.mrf.mxu1 }
 0x382   :  { %v870_v9 = vpop.f32.mrf.mxu1 }
 0x383   :  { %v876_v42 = vadd.f32 %v870_v9, %v1819_v30 }
 0x384   :  { %v739_v12 = vpop.f32.mrf.mxu3 }
 0x385   :  { %v745_v43 = vadd.f32 %v739_v12, %v1819_v30  ;;  %1191 = vmatmul.msk.f32.vlgmr.msrb.gmra.mxu3 %vm355_vm8, %v876_v42 }
 0x387   :  { %1180 = vmatmul.msk.f32.vlgmr.msrb.gmra.mxu0 %vm355_vm8, %v745_v43 }
 0x38a   :  { %v873_v2 = vpop.f32.mrf.mxu1 }
 0x38b   :  { %v877_v44 = vadd.f32 %v873_v2, %v1824_v36 }
 0x38c   :  { %v742_v0 = vpop.f32.mrf.mxu3 }
 0x38d   :  { %v746_v45 = vadd.f32 %v742_v0, %v1824_v36  ;;  %1192 = vmatmul.msk.f32.gmra.mxu3 %vm355_vm8, %v877_v44  ;;  %v1203_v44 = vld [vmem:[%s1964_s14 + $0x58] sm:$0xff]  ;;  %v1202_v0 = vld [vmem:[%s1964_s14 + $0x50] sm:$0xff] }
 0x38e   :  { %1045 = vmatpush.msra.mxu1 %v1203_v44 }
 0x38f   :  { %1181 = vmatmul.msk.f32.gmra.mxu0 %vm355_vm8, %v746_v45  ;;  %v1201_v45 = vld [vmem:[%s1964_s14 + $0x48] sm:$0xff] }
 0x390   :  { %1046 = vmatpush.msra.mxu1 %v1202_v0 }
 0x392   :  { %1047 = vmatpush.msra.mxu1 %v1201_v45 }
 0x404   :  { %v778_v14 = vpop.f32.mrf.mxu0 }
 0x405   :  { %v779_v15 = vadd.f32 %v1239_v7, %v778_v14 }
 0x407   :  { %v800_v20 = vsub.f32 %v779_v15, %v1240_v13 }
 0x408   :  { %v911_v23 = vpop.f32.mrf.mxu3 }
 0x409   :  { %v807_v24 = vmul.f32 %v805_v16, %v800_v20  ;;  %v912_v26 = vadd.f32 %v1242_v17, %v911_v23 }
 0x40b   :  { %v813_v28 = vadd.f32 %v1241_v21, %v807_v24  ;;  %v935_v29 = vsub.f32 %v912_v26, %v1243_v22 }
 0x40c   :  { %v781_v32 = vpop.f32.mrf.mxu0 }
 0x40d   :  { %v815_v34 = vmax.f32 %v813_v28, 0.0  ;;  %v943_v35 = vmul.f32 %v941_v27, %v935_v29  ;;  %v782_v33 = vadd.f32 %v1239_v7, %v781_v32  ;;  %v1208_v7 = vld [vmem:[%s1966_s16 + $0x2] sm:$0x1]  ;;  %v1250_v32 = vld [vmem:[#allocation15 + $0x2] ss:$0 sm:$0xff] }
 0x40f   :  { %v950_v37 = vadd.f32 %v1244_v31, %v943_v35  ;;  %v801_v3 = vsub.f32 %v782_v33, %v1240_v13  ;;  %1182 = vmatmul.msk.f32.vlgmr.msrb.gmra.mxu2 %vm216_vm0, %v815_v34 }
 0x410   :  { %v914_v4 = vpop.f32.mrf.mxu3 }
 0x411   :  { %v952_v5 = vmax.f32 %v950_v37, 0.0  ;;  %v808_v6 = vmul.f32 %v805_v16, %v801_v3  ;;  %v915_v38 = vadd.f32 %v1242_v17, %v914_v4  ;;  %v1249_v17 = vld [vmem:[#allocation12 + $0x2] ss:$0 sm:$0xff] }
 0x413   :  { %v936_v39 = vsub.f32 %v915_v38, %v1243_v22  ;;  %1196 = vmatmul.msk.f32.vlgmr.msra.gmra.mxu0 %vm216_vm0, %v952_v5  ;;  %v814_v9 = vadd.f32 %v1241_v21, %v808_v6 }
 0x415   :  { %v944_v42 = vmul.f32 %v941_v27, %v936_v39  ;;  %v816_v12 = vmax.f32 %v814_v9, 0.0 }
 0x417   :  { %1183 = vmatmul.msk.f32.gmra.mxu2 %vm216_vm0, %v816_v12  ;;  %v951_v43 = vadd.f32 %v1244_v31, %v944_v42  ;;  %v1245_v31 = vld [vmem:[#allocation15 + $0x1] ss:$0 sm:$0xff] }
 0x419   :  { %v953_v2 = vmax.f32 %v951_v43, 0.0 }
 0x41b   :  { %1197 = vmatmul.msk.f32.gmra.mxu0 %vm216_vm0, %v953_v2 }
 0x41f   :  { %1198 = vmatmul.msk.f32.vlgmr.msra.gmra.mxu2 %vm248_vm1, %v1760_v19  ;;  %v1200_v19 = vld [vmem:[%s1964_s14 + $0x40] sm:$0xff] }
 0x420   :  { %1048 = vmatpush.msra.mxu1 %v1200_v19 }
 0x427   :  { %1199 = vmatmul.msk.f32.gmra.mxu2 %vm248_vm1, %v1765_v25  ;;  %v1238_v25 = vld [vmem:[%s1963_s13] ss:$0 sm:$0xff] }
 0x428   :  { %v717_v48 = vadd.f32 %v1238_v25, %v1866_v40  ;;  %v720_v52 = vadd.f32 %v1238_v25, %v1868_v41  ;;  %v1207_v40 = vld [vmem:[%s1969_s19 + $0x2] sm:$0x1] }
 0x429   :  { %v1058_v59 = vadd.f32 1e-05, %v1207_v40 }
 0x42b   :  { %1261 = vrsqrt.f32 %v1058_v59  ;;  %vm1065_vm1 = vweird.f32 %v1058_v59 }
 0x431   :  { %v1262_v60 = vpop.eup %1261 }
 0x432   :  { %v1060_v41 = vmul.f32 %v1262_v60, %v1058_v59  ;;  %vm1066_vm4 = vweird.f32 %v1262_v60 }
 0x433   :  { %vm1067_vm5 = vmor %vm1065_vm1, %vm1066_vm4 }
 0x490   :  { %v984_v29 = vpop.f32.mrf.mxu0 }
 0x491   :  { %v985_v34 = vadd.f32 %v1245_v31, %v984_v29 }
 0x492   :  { %v845_v47 = vpop.f32.mrf.mxu2 }
 0x493   :  { %v846_v49 = vadd.f32 %v1246_v46, %v845_v47 }
 0x495   :  { %v851_v50 = vadd.f32 %v846_v49, %v717_v48 }
 0x497   :  { %v990_v33 = vadd.f32 %v985_v34, %v851_v50 }
 0x498   :  { %v987_v4 = vpop.f32.mrf.mxu0 }
 0x499   :  { %v988_v5 = vadd.f32 %v1245_v31, %v987_v4 }
 0x49a   :  { %v848_v51 = vpop.f32.mrf.mxu2 }
 0x49b   :  { %v849_v53 = vadd.f32 %v1246_v46, %v848_v51 }
 0x49d   :  { %v852_v54 = vadd.f32 %v849_v53, %v720_v52 }
 0x49f   :  { %v991_v38 = vadd.f32 %v988_v5, %v852_v54 }
 0x4a2   :  { %v1009_v55 = vpop.f32.mrf.mxu2 }
 0x4a3   :  { %v1015_v56 = vadd.f32 %v1009_v55, %v1819_v30  ;;  %v1061_v30 = vmul.f32 %v1262_v60, %v1060_v41 }
 0x4a5   :  { %1205 = vmatmul.msk.f32.vlgmr.msra.gmra.mxu1 %vm355_vm8, %v1015_v56  ;;  %v1062_v62 = vmul.f32 0.5, %v1061_v30 }
 0x4a7   :  { %v1063_v63 = vsub.f32 1.5, %v1062_v62 }
 0x4aa   :  { %v1012_v57 = vpop.f32.mrf.mxu2 }
 0x4ab   :  { %v1016_v58 = vadd.f32 %v1012_v57, %v1824_v36  ;;  %v1064_v36 = vmul.f32 %v1262_v60, %v1063_v63 }
 0x4ad   :  { %1206 = vmatmul.msk.f32.gmra.mxu1 %vm355_vm8, %v1016_v58  ;;  %v1068_v1 = vsel %vm1067_vm5, %v1262_v60, %v1064_v36 }
 0x4ae   :  { %v1078_v10 = vmul.f32 %v1208_v7, %v1068_v1 }
 0x4b0   :  { %v1080_v15 = vperm.slane %v1078_v10, 0 }
 0x522   :  { %v1050_v13 = vpop.f32.mrf.mxu1 }
 0x523   :  { %v1051_v14 = vadd.f32 %v1247_v8, %v1050_v13 }
 0x525   :  { %v1074_v16 = vsub.f32 %v1051_v14, %v1248_v11 }
 0x527   :  { %v1082_v18 = vmul.f32 %v1080_v15, %v1074_v16 }
 0x529   :  { %v1089_v20 = vadd.f32 %v1249_v17, %v1082_v18 }
 0x52a   :  { %v1053_v21 = vpop.f32.mrf.mxu1 }
 0x52b   :  { %v1091_v22 = vmax.f32 %v1089_v20, 0.0  ;;  %v1054_v23 = vadd.f32 %v1247_v8, %v1053_v21 }
 0x52d   :  { %v1075_v24 = vsub.f32 %v1054_v23, %v1248_v11  ;;  %1210 = vmatmul.msk.f32.vlgmr.msra.gmra.mxu3 %vm216_vm0, %v1091_v22 }
 0x52f   :  { %v1083_v26 = vmul.f32 %v1080_v15, %v1075_v24 }
 0x531   :  { %v1090_v27 = vadd.f32 %v1249_v17, %v1083_v26 }
 0x533   :  { %v1092_v28 = vmax.f32 %v1090_v27, 0.0 }
 0x535   :  { %1211 = vmatmul.msk.f32.gmra.mxu3 %vm216_vm0, %v1092_v28 }
 0x5b0   :  { %v1123_v35 = vpop.f32.mrf.mxu3 }
 0x5b1   :  { %v1124_v37 = vadd.f32 %v1250_v32, %v1123_v35 }
 0x5b3   :  { %v1129_v3 = vadd.f32 %v1124_v37, %v990_v33 }
 0x5b5   :  { %1131 = vst.msk [vmem:[%s1972_s22] sm:$0xff] %vm216_vm0, %v1129_v3 }
 0x5b8   :  { %v1126_v6 = vpop.f32.mrf.mxu3 }
 0x5b9   :  { %v1127_v39 = vadd.f32 %v1250_v32, %v1126_v6 }
 0x5bb   :  { %v1130_v9 = vadd.f32 %v1127_v39, %v991_v38 }
 0x5bd   :  { %1132 = vst.msk [vmem:[%s1972_s22 + $0x8] sm:$0xff] %vm216_vm0, %v1130_v9 }
 0x5be   :  { %1137 = vsyncpa [#allocation3], 1 }
 0x5bf   :  { %1138 = vsyncpa [#allocation5], 1 }
 0x5c0   :  { %1139 = vsyncpa [#allocation8], 1 }
 0x5c1   :  { %1140 = vsyncpa [#allocation11], 1 }
 0x5c2   :  { %1141 = vsyncpa [#allocation14], 1 }

</bundles_post_ra>
